<compile_context>
chip_gen: v5e
topology: v5e:2x2
jax: 0.10.0
libtpu: 0.0.40
codegen_flags: <defaults>
</compile_context>

<pallas_src>
import jax
import jax.numpy as jnp
from jax.experimental import pallas as pl
from jax.experimental.pallas import tpu as pltpu


def _ce_kernel(logits_ref, target_ref, nll_ref):
    """One grid step: per-row negative log-likelihood for a (tn, C) row block.

    logits_ref : VMEM (tn, C) float (any float dtype; math done in f32)
    target_ref : VMEM (tn, 1) int32 class indices (-1 marks a padded row)
    nll_ref    : VMEM (tn, 1) f32 per-row NLL (0 for padded rows)
    """
    x = logits_ref[...].astype(jnp.float32)                          # (tn, C)
    t = target_ref[...]                                              # (tn, 1)

    # numerically-stable shift; only x - m stays live afterwards
    m = jnp.max(x, axis=-1, keepdims=True)                           # (tn, 1)
    xm = x - m                                                       # (tn, C)

    # gather the (shifted) target logit with a broadcast one-hot compare
    col = jax.lax.broadcasted_iota(jnp.int32, (1, x.shape[-1]), 1)   # (1, C)
    tgt = jnp.sum(jnp.where(col == t, xm, 0.0),
                  axis=-1, keepdims=True)                            # (tn, 1)

    # loss_row = logsumexp(x) - x[t] = log(sum(exp(x - m))) - (x[t] - m)
    lse_shift = jnp.log(jnp.sum(jnp.exp(xm), axis=-1, keepdims=True))  # (tn,1)

    valid = t >= 0                                                   # pad mask
    nll_ref[...] = jnp.where(valid, lse_shift - tgt, 0.0)


def _row_alignment(dtype):
    # sublane packing: f32 -> 8, bf16 -> 16, int8/fp8 -> 32
    return max(8, 32 // jnp.dtype(dtype).itemsize)


def cross_entropy_loss(logits, target, *, tn=None,
                       vmem_budget_bytes=24 * 1024 * 1024):
    """Pallas equivalent of nn.CrossEntropyLoss()(logits, target).

    logits : (N, C) float array (f32 or bf16) of unnormalized class scores
    target : (N,)   integer class indices in [0, C)
    returns: scalar f32 mean loss
    """
    N, C = logits.shape
    itemsize = jnp.dtype(logits.dtype).itemsize
    align = _row_alignment(logits.dtype)

    # --- pick the row tile: biggest aligned tile that double-buffers in VMEM
    if tn is None:
        budget_rows = vmem_budget_bytes // (2 * C * itemsize)
        tn = max(align, min(1024, (budget_rows // align) * align))
    else:
        tn = max(align, (tn // align) * align)
    n_aligned = ((N + align - 1) // align) * align
    tn = min(tn, n_aligned)

    # --- pad rows so the grid divides evenly; padded rows get target = -1
    n_pad = pl.cdiv(N, tn) * tn
    target_i32 = target.astype(jnp.int32)
    if n_pad != N:
        logits = jnp.pad(logits, ((0, n_pad - N), (0, 0)))
        target_i32 = jnp.pad(target_i32, (0, n_pad - N), constant_values=-1)
    target2d = target_i32.reshape(n_pad, 1)

    # scoped VMEM: double-buffered logits block + small target/output blocks
    block_bytes = 2 * tn * C * itemsize + 2 * tn * 4 + 2 * tn * 4
    vmem_limit = max(block_bytes + block_bytes // 2 + (4 << 20), 32 << 20)

    nll = pl.pallas_call(
        _ce_kernel,
        out_shape=jax.ShapeDtypeStruct((n_pad, 1), jnp.float32),
        grid_spec=pltpu.PrefetchScalarGridSpec(
            num_scalar_prefetch=0,
            grid=(n_pad // tn,),
            in_specs=[
                pl.BlockSpec((tn, C), lambda i: (i, 0)),
                pl.BlockSpec((tn, 1), lambda i: (i, 0)),
            ],
            out_specs=pl.BlockSpec((tn, 1), lambda i: (i, 0)),
        ),
        compiler_params=pltpu.CompilerParams(
            dimension_semantics=("parallel",),   # disjoint output blocks
            vmem_limit_bytes=int(vmem_limit),
        ),
    )(logits, target2d)

    # tiny reduction in plain JAX (padded rows contribute exactly 0)
    return jnp.sum(nll) / jnp.float32(N)


def _reference_ce(logits, target):
    x = logits.astype(jnp.float32)
    lse = jax.scipy.special.logsumexp(x, axis=-1)
    tgt = jnp.take_along_axis(x, target[:, None].astype(jnp.int32), axis=-1)[:, 0]
    return jnp.mean(lse - tgt)


if __name__ == "__main__":
    key = jax.random.PRNGKey(0)
    k1, k2, k3, k4 = jax.random.split(key, 4)

    # case 1: f32 logits, tile-aligned rows
    N1, C1 = 16, 128
    logits1 = jax.random.normal(k1, (N1, C1), dtype=jnp.float32)
    target1 = jax.random.randint(k2, (N1,), 0, C1, dtype=jnp.int32)
    loss1 = jax.block_until_ready(cross_entropy_loss(logits1, target1))
    ref1 = _reference_ce(logits1, target1)
    assert jnp.allclose(loss1, ref1, atol=1e-5, rtol=1e-5), (loss1, ref1)

    # case 2: bf16 logits, N not a multiple of the row alignment
    # (exercises the half-traffic path and the row-padding/mask path)
    N2, C2 = 20, 256
    logits2 = jax.random.normal(k3, (N2, C2), dtype=jnp.bfloat16)
    target2 = jax.random.randint(k4, (N2,), 0, C2, dtype=jnp.int32)
    loss2 = jax.block_until_ready(cross_entropy_loss(logits2, target2))
    ref2 = _reference_ce(logits2, target2)
    assert jnp.allclose(loss2, ref2, atol=1e-4, rtol=1e-4), (loss2, ref2)

    print("KERNEL_OK")
</pallas_src>

<mosaic_0001>
module attributes {stable_mosaic.version = 11 : i64} {
  func.func @_ce_kernel(%arg0: i32, %arg1: memref<16x128xf32, #tpu.memory_space<vmem>>, %arg2: memref<16x1xi32, #tpu.memory_space<vmem>>, %arg3: memref<16x1xf32, #tpu.memory_space<vmem>>) attributes {dimension_semantics = [#tpu.dimension_semantics<parallel>], iteration_bounds = array<i64: 1>, scalar_prefetch = 0 : i64, scratch_operands = 0 : i64, tpu.core_type = #tpu.core_type<tc>, window_params = [{transform_indices = @transform_0, window_bounds = array<i64: 16, 128>}, {transform_indices = @transform_1, window_bounds = array<i64: 16, 1>}, {transform_indices = @transform_2, window_bounds = array<i64: 16, 1>}]} {
    %c0 = arith.constant 0 : index
    %c0_0 = arith.constant 0 : index
    %0 = vector.load %arg1[%c0, %c0_0] : memref<16x128xf32, #tpu.memory_space<vmem>>, vector<16x128xf32>
    %c0_1 = arith.constant 0 : index
    %c0_2 = arith.constant 0 : index
    %1 = vector.load %arg2[%c0_1, %c0_2] : memref<16x1xi32, #tpu.memory_space<vmem>>, vector<16x1xi32>
    %cst = arith.constant dense<0xFF800000> : vector<16xf32>
    %2 = vector.multi_reduction <maximumf>, %0, %cst [1] : vector<16x128xf32> to vector<16xf32>
    %3 = vector.shape_cast %2 : vector<16xf32> to vector<16x1xf32>
    %4 = vector.broadcast %3 : vector<16x1xf32> to vector<16x128xf32>
    %5 = arith.subf %0, %4 : vector<16x128xf32>
    %6 = tpu.iota {dimensions = array<i32: 1>} : vector<1x128xi32>
    %7 = vector.broadcast %6 : vector<1x128xi32> to vector<16x128xi32>
    %8 = vector.broadcast %1 : vector<16x1xi32> to vector<16x128xi32>
    %9 = arith.cmpi eq, %7, %8 : vector<16x128xi32>
    %cst_3 = arith.constant 0.000000e+00 : f32
    %10 = vector.broadcast %cst_3 : f32 to vector<16x128xf32>
    %11 = arith.select %9, %5, %10 : vector<16x128xi1>, vector<16x128xf32>
    %cst_4 = arith.constant dense<0.000000e+00> : vector<16xf32>
    %12 = vector.multi_reduction <add>, %11, %cst_4 [1] : vector<16x128xf32> to vector<16xf32>
    %13 = vector.shape_cast %12 : vector<16xf32> to vector<16x1xf32>
    %14 = math.exp %5 : vector<16x128xf32>
    %cst_5 = arith.constant dense<0.000000e+00> : vector<16xf32>
    %15 = vector.multi_reduction <add>, %14, %cst_5 [1] : vector<16x128xf32> to vector<16xf32>
    %16 = vector.shape_cast %15 : vector<16xf32> to vector<16x1xf32>
    %17 = math.log %16 : vector<16x1xf32>
    %c0_i32 = arith.constant 0 : i32
    %18 = vector.broadcast %c0_i32 : i32 to vector<16x1xi32>
    %19 = arith.cmpi sge, %1, %18 : vector<16x1xi32>
    %20 = arith.subf %17, %13 : vector<16x1xf32>
    %cst_6 = arith.constant 0.000000e+00 : f32
    %21 = vector.broadcast %cst_6 : f32 to vector<16x1xf32>
    %22 = arith.select %19, %20, %21 : vector<16x1xi1>, vector<16x1xf32>
    %c0_7 = arith.constant 0 : index
    %c0_8 = arith.constant 0 : index
    %23 = vector.load %arg3[%c0_7, %c0_8] : memref<16x1xf32, #tpu.memory_space<vmem>>, vector<16x1xf32>
    tpu.vector_store %arg3[%c0_7, %c0_8], %22 {strides = array<i32>} : memref<16x1xf32, #tpu.memory_space<vmem>>, vector<16x1xf32>,
    return
  }
  func.func @transform_0(%arg0: i32) -> (i32, i32) {
    %c0_i32 = arith.constant 0 : i32
    %c0_i32_0 = arith.constant 0 : i32
    return %arg0, %c0_i32 : i32, i32
  }
  func.func @transform_1(%arg0: i32) -> (i32, i32) {
    %c0_i32 = arith.constant 0 : i32
    %c0_i32_0 = arith.constant 0 : i32
    return %arg0, %c0_i32 : i32, i32
  }
  func.func @transform_2(%arg0: i32) -> (i32, i32) {
    %c0_i32 = arith.constant 0 : i32
    %c0_i32_0 = arith.constant 0 : i32
    return %arg0, %c0_i32 : i32, i32
  }
}

</mosaic_0001>

<bundles_post_ra>
// kernel: tpu_custom_call.1
= control target key start
LH: loop header
LB: loop body
LE: loop exit
PB: predicated region body
PF: predicated region fallthrough
CT: control target
= control target key end

     0   :  { %v73_v1 = vmov 0   ;;  %v21_v5 = vlaneseq  ;;  %vm55_vm3 = vcmask 7168   ;;  %s107_s0 = inlined_call_operand.vmem [shape: f32[16,128], index: 0, kind: input, shape index: {}]   ;;  %s108_s1 = inlined_call_operand.vmem [shape: s32[16,1], index: 1, kind: input, shape index: {}]   ;;  %s109_s2 = inlined_call_operand.vmem [shape: f32[16,1], index: 2, kind: output, shape index: {}]  }
   0x1   :  { %v11_v0 = vld [vmem:[%s107_s0] sm:$0xff]  ;;  %63 = vset.pattern.permute.xlu1 %v73_v1  ;;  %64 = vset.pattern.permute.xlu0 %v73_v1  ;;  %v12_v3 = vld [vmem:[%s107_s0 + $0x8] sm:$0xff] }
   0x2   :  { %v13_v2 = vld [vmem:[%s108_s1] sm:$0xff]  ;;  %15 = vmax.xlane.f32.xlu0 %v11_v0  ;;  %v14_v4 = vld [vmem:[%s108_s1 + $0x8] sm:$0xff]  ;;  %v22_v6 = vand.u32 127, %v21_v5 }
   0x3   :  { %24 = vperm.xlu1 %63, %v13_v2   ;;  %vm49_vm2 = vcmp.ge.s32.totalorder %v13_v2, 0  ;;  %vm50_vm4 = vcmp.ge.s32.totalorder %v14_v4, 0 }
   0xa   :  { %17 = vmax.xlane.f32.xlu0 %v12_v3 }
   0xb   :  { %27 = vperm.xlu1 %63, %v14_v4  }
  0x75   :  { %v25_v7 = vpop.permute.xlu1 %24  ;;  %v16_v8 = vpop.xlane.xlu0 %15 }
  0x76   :  { %vm29_vm0 = vcmp.eq.s32.totalorder %v22_v6, %v25_v7  ;;  %v19_v9 = vsub.f32 %v11_v0, %v16_v8 }
  0x78   :  { %v31_v10 = vsel %vm29_vm0, %v19_v9, 0.0  ;;  %v37_v11 = vmul.f32 1.442695, %v19_v9 }
  0x79   :  { %33 = vadd.xlane.f32.xlu0 %v31_v10 }
  0x7a   :  { %65 = vpow2.f32 %v37_v11 }
  0x7d   :  { %v28_v12 = vpop.permute.xlu1 %27  ;;  %v18_v13 = vpop.xlane.xlu0 %17 }
  0x7e   :  { %vm30_vm1 = vcmp.eq.s32.totalorder %v22_v6, %v28_v12  ;;  %v20_v14 = vsub.f32 %v12_v3, %v18_v13 }
  0x80   :  { %v66_v15 = vpop.eup %65  ;;  %v39_v16 = vmul.f32 1.442695, %v20_v14  ;;  %v32_v17 = vsel %vm30_vm1, %v20_v14, 0.0 }
  0x81   :  { %41 = vadd.xlane.f32.xlu2 %v66_v15  ;;  %35 = vadd.xlane.f32.xlu1 %v32_v17 }
  0x82   :  { %67 = vpow2.f32 %v39_v16 }
  0x88   :  { %v68_v18 = vpop.eup %67 }
  0x89   :  { %43 = vadd.xlane.f32.xlu2 %v68_v18 }
  0xec   :  { %v34_v23 = vpop.xlane.xlu0 %33 }
  0xf4   :  { %v42_v19 = vpop.xlane.xlu2 %41  ;;  %v36_v28 = vpop.xlane.xlu1 %35 }
  0xf5   :  { %69 = vlog2.f32 %v42_v19 }
  0xfb   :  { %v70_v20 = vpop.eup %69 }
  0xfc   :  { %v46_v21 = vmul.f32 0.6931472, %v70_v20  ;;  %v44_v22 = vpop.xlane.xlu2 %43 }
  0xfd   :  { %71 = vlog2.f32 %v44_v22 }
  0xfe   :  { %v51_v24 = vsub.f32 %v46_v21, %v34_v23 }
 0x100   :  { %v53_v25 = vsel %vm49_vm2, %v51_v24, 0.0 }
 0x101   :  { %56 = vst.msk [vmem:[%s109_s2] sm:$0xff] %vm55_vm3, %v53_v25 }
 0x103   :  { %v72_v26 = vpop.eup %71 }
 0x104   :  { %v48_v27 = vmul.f32 0.6931472, %v72_v26 }
 0x106   :  { %v52_v29 = vsub.f32 %v48_v27, %v36_v28 }
 0x108   :  { %v54_v30 = vsel %vm50_vm4, %v52_v29, 0.0 }
 0x109   :  { %57 = vst.msk [vmem:[%s109_s2 + $0x8] sm:$0xff] %vm55_vm3, %v54_v30 }

</bundles_post_ra>
